<compile_context>
chip_gen: v7x
topology: tpu7x:2x2x1
jax: 0.10.0
libtpu: 0.0.40
codegen_flags: <defaults>
</compile_context>

<pallas_src>
import jax
import jax.numpy as jnp
from jax import lax
from jax.experimental import pallas as pl
from jax.experimental.pallas import tpu as pltpu


# ----------------------------------------------------------------------------
# Pallas kernel: full LSTM sequence + output projection in one invocation.
# ----------------------------------------------------------------------------
def _lstm_seq_kernel(x_ref,      # (B, T, Z)   f32
                     w_ih_ref,   # (Z, 4H)     bf16
                     w_hh_ref,   # (H, 4H)     bf16
                     b_ref,      # (1, 4H)     f32   (b_ih + b_hh)
                     w_out_ref,  # (H, X)      bf16
                     b_out_ref,  # (1, X)      f32
                     y_ref,      # (B, T, X)   f32
                     h_scratch): # (B, T, H)   f32 VMEM scratch
    B, T, Z = x_ref.shape
    H = w_hh_ref.shape[0]
    X = w_out_ref.shape[1]

    # --- Hoisted input projection: ONE flat 2-D MXU matmul for all timesteps.
    x_flat = x_ref[...].reshape(B * T, Z).astype(jnp.bfloat16)
    gates_x = (jnp.dot(x_flat, w_ih_ref[...],
                       preferred_element_type=jnp.float32)
               + b_ref[...]).reshape(B, T, 4 * H)            # (B, T, 4H) f32

    w_hh = w_hh_ref[...]                                     # (H, 4H) bf16
    # TODO(synk): hold W_hh resident in the MXU across the serial steps with
    # pltpu.matmul_push_rhs / matmul_acc_lhs / matmul_pop; relying on Mosaic
    # hoisting the weight staging out of the unrolled loop for now.

    # --- Serial recurrence, statically unrolled (T is small and static).
    h = jnp.zeros((B, H), jnp.float32)
    c = jnp.zeros((B, H), jnp.float32)
    for t in range(T):
        gates = gates_x[:, t, :] + jnp.dot(
            h.astype(jnp.bfloat16), w_hh,
            preferred_element_type=jnp.float32)              # (B, 4H) f32
        # 2 full-width EUP pushes instead of 4 sliced ones.
        sg = jax.nn.sigmoid(gates)
        tg = jnp.tanh(gates)
        # PyTorch gate order: i, f, g, o
        i_g = sg[:, 0 * H:1 * H]
        f_g = sg[:, 1 * H:2 * H]
        g_g = tg[:, 2 * H:3 * H]
        o_g = sg[:, 3 * H:4 * H]
        c = f_g * c + i_g * g_g
        h = o_g * jnp.tanh(c)
        h_scratch[:, t:t + 1, :] = h.reshape(B, 1, H)        # static offset

    # --- Hoisted output projection: ONE flat 2-D matmul + one full store.
    h_all = h_scratch[...].reshape(B * T, H).astype(jnp.bfloat16)
    y = jnp.dot(h_all, w_out_ref[...],
                preferred_element_type=jnp.float32) + b_out_ref[...]
    y_ref[...] = y.reshape(B, T, X).astype(y_ref.dtype)


def vanilla_lstm_forward(x, kp):
    """x: (B, T, Z) float32, batch_first -> outputs (B, T, X) float32."""
    B, T, Z = x.shape
    H, G = kp["w_hh_t"].shape
    X = kp["w_out_t"].shape[1]

    grid_spec = pltpu.PrefetchScalarGridSpec(
        num_scalar_prefetch=0,
        grid=(1,),  # single invocation: whole problem lives in VMEM
        in_specs=[
            pl.BlockSpec((B, T, Z), lambda i: (0, 0, 0)),
            pl.BlockSpec((Z, G), lambda i: (0, 0)),
            pl.BlockSpec((H, G), lambda i: (0, 0)),
            pl.BlockSpec((1, G), lambda i: (0, 0)),
            pl.BlockSpec((H, X), lambda i: (0, 0)),
            pl.BlockSpec((1, X), lambda i: (0, 0)),
        ],
        out_specs=pl.BlockSpec((B, T, X), lambda i: (0, 0, 0)),
        scratch_shapes=[pltpu.VMEM((B, T, H), jnp.float32)],
    )

    return pl.pallas_call(
        _lstm_seq_kernel,
        out_shape=jax.ShapeDtypeStruct((B, T, X), jnp.float32),
        grid_spec=grid_spec,
        compiler_params=pltpu.CompilerParams(
            dimension_semantics=("arbitrary",)),
    )(x, kp["w_ih_t"], kp["w_hh_t"], kp["b"], kp["w_out_t"], kp["b_out"])


# ----------------------------------------------------------------------------
# Parameters.
# ----------------------------------------------------------------------------
def init_vanilla_lstm_params(key, z_dim, x_dim, hidden_dim):
    """PyTorch-layout raw parameters (used by the f32 reference)."""
    k = jax.random.split(key, 6)
    scale = 1.0 / jnp.sqrt(hidden_dim)
    return {
        "w_ih": jax.random.uniform(k[0], (4 * hidden_dim, z_dim),
                                   jnp.float32, -scale, scale),
        "w_hh": jax.random.uniform(k[1], (4 * hidden_dim, hidden_dim),
                                   jnp.float32, -scale, scale),
        "b_ih": jax.random.uniform(k[2], (4 * hidden_dim,),
                                   jnp.float32, -scale, scale),
        "b_hh": jax.random.uniform(k[3], (4 * hidden_dim,),
                                   jnp.float32, -scale, scale),
        "w_out": jax.random.uniform(k[4], (x_dim, hidden_dim),
                                    jnp.float32, -scale, scale),
        "b_out": jax.random.uniform(k[5], (x_dim,),
                                    jnp.float32, -scale, scale),
    }


def prepare_kernel_params(raw):
    """One-time weight prep (transposes, bias combine, bf16 casts).

    Done once at init so the per-call path contains only the pallas_call.
    """
    H = raw["w_hh"].shape[1]
    X = raw["w_out"].shape[0]
    return {
        "w_ih_t": jnp.transpose(raw["w_ih"]).astype(jnp.bfloat16),   # (Z, 4H)
        "w_hh_t": jnp.transpose(raw["w_hh"]).astype(jnp.bfloat16),   # (H, 4H)
        "b": (raw["b_ih"] + raw["b_hh"]).reshape(1, 4 * H),          # f32
        "w_out_t": jnp.transpose(raw["w_out"]).astype(jnp.bfloat16), # (H, X)
        "b_out": raw["b_out"].reshape(1, X),                         # f32
    }


def init_nblstm_params(key, z_dim, x_dim, hidden_dim=32):
    k_f, k_p = jax.random.split(key)
    raw = {
        "filtering": init_vanilla_lstm_params(k_f, z_dim, x_dim, hidden_dim),
        # prediction params exist (matching the PyTorch module) but, exactly
        # like the PyTorch forward, are never used.
        "prediction": init_vanilla_lstm_params(k_p, z_dim, x_dim, hidden_dim),
    }
    kernel = {
        "filtering": prepare_kernel_params(raw["filtering"]),
        "prediction": prepare_kernel_params(raw["prediction"]),
    }
    return raw, kernel


@jax.jit
def nblstm_forward(kernel_params, measurements):
    # The PyTorch forward calls self.filtering_model twice on the *same*
    # input, so both outputs are numerically identical.  Run the kernel once
    # and return the result for both (no redundant second pass).
    filtering_outputs = vanilla_lstm_forward(
        measurements, kernel_params["filtering"])
    prediction_outputs = filtering_outputs
    return filtering_outputs, prediction_outputs


# ----------------------------------------------------------------------------
# Pure-JAX f32 reference for correctness checking.
# ----------------------------------------------------------------------------
def vanilla_lstm_reference(x, params):
    B, T, Z = x.shape
    H = params["w_hh"].shape[1]
    w_ih_t = params["w_ih"].T
    w_hh_t = params["w_hh"].T
    b = params["b_ih"] + params["b_hh"]

    def step(carry, x_t):
        h, c = carry
        gates = x_t @ w_ih_t + h @ w_hh_t + b
        i = jax.nn.sigmoid(gates[:, 0 * H:1 * H])
        f = jax.nn.sigmoid(gates[:, 1 * H:2 * H])
        g = jnp.tanh(gates[:, 2 * H:3 * H])
        o = jax.nn.sigmoid(gates[:, 3 * H:4 * H])
        c = f * c + i * g
        h = o * jnp.tanh(c)
        y = h @ params["w_out"].T + params["b_out"]
        return (h, c), y

    init = (jnp.zeros((B, H), jnp.float32), jnp.zeros((B, H), jnp.float32))
    _, ys = lax.scan(step, init, jnp.transpose(x, (1, 0, 2)))
    return jnp.transpose(ys, (1, 0, 2))


if __name__ == "__main__":
    z_dim, x_dim, hidden = 4, 4, 32
    batch, seq = 2, 8

    key = jax.random.PRNGKey(0)
    k_param, k_data = jax.random.split(key)
    raw_params, kernel_params = init_nblstm_params(k_param, z_dim, x_dim, hidden)
    measurements = jax.random.normal(k_data, (batch, seq, z_dim), jnp.float32)

    filt_out, pred_out = nblstm_forward(kernel_params, measurements)
    jax.block_until_ready((filt_out, pred_out))

    ref = vanilla_lstm_reference(measurements, raw_params["filtering"])
    assert filt_out.shape == (batch, seq, x_dim)
    assert pred_out.shape == (batch, seq, x_dim)
    # bf16 matmul operands (f32 state / accumulation) -> loosened tolerance.
    assert jnp.allclose(filt_out, ref, atol=2e-2, rtol=2e-2)
    assert jnp.allclose(pred_out, ref, atol=2e-2, rtol=2e-2)

    print("KERNEL_OK")
</pallas_src>

<mosaic_0001>
module attributes {stable_mosaic.version = 11 : i64} {
  func.func @_lstm_seq_kernel(%arg0: i32, %arg1: memref<2x8x4xf32, #tpu.memory_space<vmem>>, %arg2: memref<4x128xbf16, #tpu.memory_space<vmem>>, %arg3: memref<32x128xbf16, #tpu.memory_space<vmem>>, %arg4: memref<1x128xf32, #tpu.memory_space<vmem>>, %arg5: memref<32x4xbf16, #tpu.memory_space<vmem>>, %arg6: memref<1x4xf32, #tpu.memory_space<vmem>>, %arg7: memref<2x8x4xf32, #tpu.memory_space<vmem>>, %arg8: memref<2x8x32xf32, #tpu.memory_space<vmem>>) attributes {dimension_semantics = [#tpu.dimension_semantics<arbitrary>], iteration_bounds = array<i64: 1>, scalar_prefetch = 0 : i64, scratch_operands = 1 : i64, tpu.core_type = #tpu.core_type<tc>, window_params = [{pipeline_mode = #tpu.pipeline_mode<synchronous>, transform_indices = @transform_0, window_bounds = array<i64: 2, 8, 4>}, {pipeline_mode = #tpu.pipeline_mode<synchronous>, transform_indices = @transform_1, window_bounds = array<i64: 4, 128>}, {pipeline_mode = #tpu.pipeline_mode<synchronous>, transform_indices = @transform_2, window_bounds = array<i64: 32, 128>}, {pipeline_mode = #tpu.pipeline_mode<synchronous>, transform_indices = @transform_3, window_bounds = array<i64: 1, 128>}, {pipeline_mode = #tpu.pipeline_mode<synchronous>, transform_indices = @transform_4, window_bounds = array<i64: 32, 4>}, {pipeline_mode = #tpu.pipeline_mode<synchronous>, transform_indices = @transform_5, window_bounds = array<i64: 1, 4>}, {pipeline_mode = #tpu.pipeline_mode<synchronous>, transform_indices = @transform_6, window_bounds = array<i64: 2, 8, 4>}]} {
    %c0 = arith.constant 0 : index
    %c0_0 = arith.constant 0 : index
    %c0_1 = arith.constant 0 : index
    %0 = vector.load %arg1[%c0, %c0_0, %c0_1] : memref<2x8x4xf32, #tpu.memory_space<vmem>>, vector<2x8x4xf32>
    %1 = vector.shape_cast %0 : vector<2x8x4xf32> to vector<16x4xf32>
    %2 = arith.truncf %1 : vector<16x4xf32> to vector<16x4xbf16>
    %c0_2 = arith.constant 0 : index
    %c0_3 = arith.constant 0 : index
    %3 = vector.load %arg2[%c0_2, %c0_3] : memref<4x128xbf16, #tpu.memory_space<vmem>>, vector<4x128xbf16>
    %cst = arith.constant dense<0.000000e+00> : vector<16x128xf32>
    %4 = tpu.matmul %2, %3, %cst {dimension_numbers = #tpu.dot_dimension_numbers<[1], [0], [0], [1], [0, 0, 1, 1], [], []>} : vector<16x4xbf16>, vector<4x128xbf16>, vector<16x128xf32> -> vector<16x128xf32>
    %c0_4 = arith.constant 0 : index
    %c0_5 = arith.constant 0 : index
    %5 = vector.load %arg4[%c0_4, %c0_5] : memref<1x128xf32, #tpu.memory_space<vmem>>, vector<1x128xf32>
    %6 = vector.broadcast %5 : vector<1x128xf32> to vector<16x128xf32>
    %7 = arith.addf %4, %6 : vector<16x128xf32>
    %8 = vector.shape_cast %7 : vector<16x128xf32> to vector<2x8x128xf32>
    %c0_6 = arith.constant 0 : index
    %c0_7 = arith.constant 0 : index
    %9 = vector.load %arg3[%c0_6, %c0_7] : memref<32x128xbf16, #tpu.memory_space<vmem>>, vector<32x128xbf16>
    %cst_8 = arith.constant 0.000000e+00 : f32
    %10 = vector.broadcast %cst_8 : f32 to vector<2x32xf32>
    %cst_9 = arith.constant 0.000000e+00 : f32
    %11 = vector.broadcast %cst_9 : f32 to vector<2x32xf32>
    %12 = vector.extract_strided_slice %8 {offsets = [0, 0, 0], sizes = [2, 1, 128], strides = [1, 1, 1]} : vector<2x8x128xf32> to vector<2x1x128xf32>
    %13 = vector.shape_cast %12 : vector<2x1x128xf32> to vector<2x128xf32>
    %14 = arith.truncf %10 : vector<2x32xf32> to vector<2x32xbf16>
    %cst_10 = arith.constant dense<0.000000e+00> : vector<2x128xf32>
    %15 = tpu.matmul %14, %9, %cst_10 {dimension_numbers = #tpu.dot_dimension_numbers<[1], [0], [0], [1], [0, 0, 1, 1], [], []>} : vector<2x32xbf16>, vector<32x128xbf16>, vector<2x128xf32> -> vector<2x128xf32>
    %16 = arith.addf %13, %15 : vector<2x128xf32>
    %17 = arith.negf %16 : vector<2x128xf32>
    %18 = math.exp %17 : vector<2x128xf32>
    %cst_11 = arith.constant 1.000000e+00 : f32
    %19 = vector.broadcast %cst_11 : f32 to vector<2x128xf32>
    %20 = arith.addf %19, %18 : vector<2x128xf32>
    %21 = arith.divf %19, %20 : vector<2x128xf32>
    %22 = math.tanh %16 : vector<2x128xf32>
    %23 = vector.extract_strided_slice %21 {offsets = [0, 0], sizes = [2, 32], strides = [1, 1]} : vector<2x128xf32> to vector<2x32xf32>
    %24 = vector.extract_strided_slice %21 {offsets = [0, 32], sizes = [2, 32], strides = [1, 1]} : vector<2x128xf32> to vector<2x32xf32>
    %25 = vector.extract_strided_slice %22 {offsets = [0, 64], sizes = [2, 32], strides = [1, 1]} : vector<2x128xf32> to vector<2x32xf32>
    %26 = vector.extract_strided_slice %21 {offsets = [0, 96], sizes = [2, 32], strides = [1, 1]} : vector<2x128xf32> to vector<2x32xf32>
    %27 = arith.mulf %24, %11 : vector<2x32xf32>
    %28 = arith.mulf %23, %25 : vector<2x32xf32>
    %29 = arith.addf %27, %28 : vector<2x32xf32>
    %30 = math.tanh %29 : vector<2x32xf32>
    %31 = arith.mulf %26, %30 : vector<2x32xf32>
    %32 = vector.shape_cast %31 : vector<2x32xf32> to vector<2x1x32xf32>
    %c0_12 = arith.constant 0 : index
    %c0_13 = arith.constant 0 : index
    %c0_14 = arith.constant 0 : index
    %33 = vector.load %arg8[%c0_12, %c0_13, %c0_14] : memref<2x8x32xf32, #tpu.memory_space<vmem>>, vector<2x1x32xf32>
    tpu.vector_store %arg8[%c0_12, %c0_13, %c0_14], %32 {strides = array<i32>} : memref<2x8x32xf32, #tpu.memory_space<vmem>>, vector<2x1x32xf32>,
    %34 = vector.extract_strided_slice %8 {offsets = [0, 1, 0], sizes = [2, 1, 128], strides = [1, 1, 1]} : vector<2x8x128xf32> to vector<2x1x128xf32>
    %35 = vector.shape_cast %34 : vector<2x1x128xf32> to vector<2x128xf32>
    %36 = arith.truncf %31 : vector<2x32xf32> to vector<2x32xbf16>
    %cst_15 = arith.constant dense<0.000000e+00> : vector<2x128xf32>
    %37 = tpu.matmul %36, %9, %cst_15 {dimension_numbers = #tpu.dot_dimension_numbers<[1], [0], [0], [1], [0, 0, 1, 1], [], []>} : vector<2x32xbf16>, vector<32x128xbf16>, vector<2x128xf32> -> vector<2x128xf32>
    %38 = arith.addf %35, %37 : vector<2x128xf32>
    %39 = arith.negf %38 : vector<2x128xf32>
    %40 = math.exp %39 : vector<2x128xf32>
    %cst_16 = arith.constant 1.000000e+00 : f32
    %41 = vector.broadcast %cst_16 : f32 to vector<2x128xf32>
    %42 = arith.addf %41, %40 : vector<2x128xf32>
    %43 = arith.divf %41, %42 : vector<2x128xf32>
    %44 = math.tanh %38 : vector<2x128xf32>
    %45 = vector.extract_strided_slice %43 {offsets = [0, 0], sizes = [2, 32], strides = [1, 1]} : vector<2x128xf32> to vector<2x32xf32>
    %46 = vector.extract_strided_slice %43 {offsets = [0, 32], sizes = [2, 32], strides = [1, 1]} : vector<2x128xf32> to vector<2x32xf32>
    %47 = vector.extract_strided_slice %44 {offsets = [0, 64], sizes = [2, 32], strides = [1, 1]} : vector<2x128xf32> to vector<2x32xf32>
    %48 = vector.extract_strided_slice %43 {offsets = [0, 96], sizes = [2, 32], strides = [1, 1]} : vector<2x128xf32> to vector<2x32xf32>
    %49 = arith.mulf %46, %29 : vector<2x32xf32>
    %50 = arith.mulf %45, %47 : vector<2x32xf32>
    %51 = arith.addf %49, %50 : vector<2x32xf32>
    %52 = math.tanh %51 : vector<2x32xf32>
    %53 = arith.mulf %48, %52 : vector<2x32xf32>
    %54 = vector.shape_cast %53 : vector<2x32xf32> to vector<2x1x32xf32>
    %c0_17 = arith.constant 0 : index
    %c1 = arith.constant 1 : index
    %c0_18 = arith.constant 0 : index
    %55 = vector.load %arg8[%c0_17, %c1, %c0_18] : memref<2x8x32xf32, #tpu.memory_space<vmem>>, vector<2x1x32xf32>
    tpu.vector_store %arg8[%c0_17, %c1, %c0_18], %54 {strides = array<i32>} : memref<2x8x32xf32, #tpu.memory_space<vmem>>, vector<2x1x32xf32>,
    %56 = vector.extract_strided_slice %8 {offsets = [0, 2, 0], sizes = [2, 1, 128], strides = [1, 1, 1]} : vector<2x8x128xf32> to vector<2x1x128xf32>
    %57 = vector.shape_cast %56 : vector<2x1x128xf32> to vector<2x128xf32>
    %58 = arith.truncf %53 : vector<2x32xf32> to vector<2x32xbf16>
    %cst_19 = arith.constant dense<0.000000e+00> : vector<2x128xf32>
    %59 = tpu.matmul %58, %9, %cst_19 {dimension_numbers = #tpu.dot_dimension_numbers<[1], [0], [0], [1], [0, 0, 1, 1], [], []>} : vector<2x32xbf16>, vector<32x128xbf16>, vector<2x128xf32> -> vector<2x128xf32>
    %60 = arith.addf %57, %59 : vector<2x128xf32>
    %61 = arith.negf %60 : vector<2x128xf32>
    %62 = math.exp %61 : vector<2x128xf32>
    %cst_20 = arith.constant 1.000000e+00 : f32
    %63 = vector.broadcast %cst_20 : f32 to vector<2x128xf32>
    %64 = arith.addf %63, %62 : vector<2x128xf32>
    %65 = arith.divf %63, %64 : vector<2x128xf32>
    %66 = math.tanh %60 : vector<2x128xf32>
    %67 = vector.extract_strided_slice %65 {offsets = [0, 0], sizes = [2, 32], strides = [1, 1]} : vector<2x128xf32> to vector<2x32xf32>
    %68 = vector.extract_strided_slice %65 {offsets = [0, 32], sizes = [2, 32], strides = [1, 1]} : vector<2x128xf32> to vector<2x32xf32>
    %69 = vector.extract_strided_slice %66 {offsets = [0, 64], sizes = [2, 32], strides = [1, 1]} : vector<2x128xf32> to vector<2x32xf32>
    %70 = vector.extract_strided_slice %65 {offsets = [0, 96], sizes = [2, 32], strides = [1, 1]} : vector<2x128xf32> to vector<2x32xf32>
    %71 = arith.mulf %68, %51 : vector<2x32xf32>
    %72 = arith.mulf %67, %69 : vector<2x32xf32>
    %73 = arith.addf %71, %72 : vector<2x32xf32>
    %74 = math.tanh %73 : vector<2x32xf32>
    %75 = arith.mulf %70, %74 : vector<2x32xf32>
    %76 = vector.shape_cast %75 : vector<2x32xf32> to vector<2x1x32xf32>
    %c0_21 = arith.constant 0 : index
    %c2 = arith.constant 2 : index
    %c0_22 = arith.constant 0 : index
    %77 = vector.load %arg8[%c0_21, %c2, %c0_22] : memref<2x8x32xf32, #tpu.memory_space<vmem>>, vector<2x1x32xf32>
    tpu.vector_store %arg8[%c0_21, %c2, %c0_22], %76 {strides = array<i32>} : memref<2x8x32xf32, #tpu.memory_space<vmem>>, vector<2x1x32xf32>,
    %78 = vector.extract_strided_slice %8 {offsets = [0, 3, 0], sizes = [2, 1, 128], strides = [1, 1, 1]} : vector<2x8x128xf32> to vector<2x1x128xf32>
    %79 = vector.shape_cast %78 : vector<2x1x128xf32> to vector<2x128xf32>
    %80 = arith.truncf %75 : vector<2x32xf32> to vector<2x32xbf16>
    %cst_23 = arith.constant dense<0.000000e+00> : vector<2x128xf32>
    %81 = tpu.matmul %80, %9, %cst_23 {dimension_numbers = #tpu.dot_dimension_numbers<[1], [0], [0], [1], [0, 0, 1, 1], [], []>} : vector<2x32xbf16>, vector<32x128xbf16>, vector<2x128xf32> -> vector<2x128xf32>
    %82 = arith.addf %79, %81 : vector<2x128xf32>
    %83 = arith.negf %82 : vector<2x128xf32>
    %84 = math.exp %83 : vector<2x128xf32>
    %cst_24 = arith.constant 1.000000e+00 : f32
    %85 = vector.broadcast %cst_24 : f32 to vector<2x128xf32>
    %86 = arith.addf %85, %84 : vector<2x128xf32>
    %87 = arith.divf %85, %86 : vector<2x128xf32>
    %88 = math.tanh %82 : vector<2x128xf32>
    %89 = vector.extract_strided_slice %87 {offsets = [0, 0], sizes = [2, 32], strides = [1, 1]} : vector<2x128xf32> to vector<2x32xf32>
    %90 = vector.extract_strided_slice %87 {offsets = [0, 32], sizes = [2, 32], strides = [1, 1]} : vector<2x128xf32> to vector<2x32xf32>
    %91 = vector.extract_strided_slice %88 {offsets = [0, 64], sizes = [2, 32], strides = [1, 1]} : vector<2x128xf32> to vector<2x32xf32>
    %92 = vector.extract_strided_slice %87 {offsets = [0, 96], sizes = [2, 32], strides = [1, 1]} : vector<2x128xf32> to vector<2x32xf32>
    %93 = arith.mulf %90, %73 : vector<2x32xf32>
    %94 = arith.mulf %89, %91 : vector<2x32xf32>
    %95 = arith.addf %93, %94 : vector<2x32xf32>
    %96 = math.tanh %95 : vector<2x32xf32>
    %97 = arith.mulf %92, %96 : vector<2x32xf32>
    %98 = vector.shape_cast %97 : vector<2x32xf32> to vector<2x1x32xf32>
    %c0_25 = arith.constant 0 : index
    %c3 = arith.constant 3 : index
    %c0_26 = arith.constant 0 : index
    %99 = vector.load %arg8[%c0_25, %c3, %c0_26] : memref<2x8x32xf32, #tpu.memory_space<vmem>>, vector<2x1x32xf32>
    tpu.vector_store %arg8[%c0_25, %c3, %c0_26], %98 {strides = array<i32>} : memref<2x8x32xf32, #tpu.memory_space<vmem>>, vector<2x1x32xf32>,
    %100 = vector.extract_strided_slice %8 {offsets = [0, 4, 0], sizes = [2, 1, 128], strides = [1, 1, 1]} : vector<2x8x128xf32> to vector<2x1x128xf32>
    %101 = vector.shape_cast %100 : vector<2x1x128xf32> to vector<2x128xf32>
    %102 = arith.truncf %97 : vector<2x32xf32> to vector<2x32xbf16>
    %cst_27 = arith.constant dense<0.000000e+00> : vector<2x128xf32>
    %103 = tpu.matmul %102, %9, %cst_27 {dimension_numbers = #tpu.dot_dimension_numbers<[1], [0], [0], [1], [0, 0, 1, 1], [], []>} : vector<2x32xbf16>, vector<32x128xbf16>, vector<2x128xf32> -> vector<2x128xf32>
    %104 = arith.addf %101, %103 : vector<2x128xf32>
    %105 = arith.negf %104 : vector<2x128xf32>
    %106 = math.exp %105 : vector<2x128xf32>
    %cst_28 = arith.constant 1.000000e+00 : f32
    %107 = vector.broadcast %cst_28 : f32 to vector<2x128xf32>
    %108 = arith.addf %107, %106 : vector<2x128xf32>
    %109 = arith.divf %107, %108 : vector<2x128xf32>
    %110 = math.tanh %104 : vector<2x128xf32>
    %111 = vector.extract_strided_slice %109 {offsets = [0, 0], sizes = [2, 32], strides = [1, 1]} : vector<2x128xf32> to vector<2x32xf32>
    %112 = vector.extract_strided_slice %109 {offsets = [0, 32], sizes = [2, 32], strides = [1, 1]} : vector<2x128xf32> to vector<2x32xf32>
    %113 = vector.extract_strided_slice %110 {offsets = [0, 64], sizes = [2, 32], strides = [1, 1]} : vector<2x128xf32> to vector<2x32xf32>
    %114 = vector.extract_strided_slice %109 {offsets = [0, 96], sizes = [2, 32], strides = [1, 1]} : vector<2x128xf32> to vector<2x32xf32>
    %115 = arith.mulf %112, %95 : vector<2x32xf32>
    %116 = arith.mulf %111, %113 : vector<2x32xf32>
    %117 = arith.addf %115, %116 : vector<2x32xf32>
    %118 = math.tanh %117 : vector<2x32xf32>
    %119 = arith.mulf %114, %118 : vector<2x32xf32>
    %120 = vector.shape_cast %119 : vector<2x32xf32> to vector<2x1x32xf32>
    %c0_29 = arith.constant 0 : index
    %c4 = arith.constant 4 : index
    %c0_30 = arith.constant 0 : index
    %121 = vector.load %arg8[%c0_29, %c4, %c0_30] : memref<2x8x32xf32, #tpu.memory_space<vmem>>, vector<2x1x32xf32>
    tpu.vector_store %arg8[%c0_29, %c4, %c0_30], %120 {strides = array<i32>} : memref<2x8x32xf32, #tpu.memory_space<vmem>>, vector<2x1x32xf32>,
    %122 = vector.extract_strided_slice %8 {offsets = [0, 5, 0], sizes = [2, 1, 128], strides = [1, 1, 1]} : vector<2x8x128xf32> to vector<2x1x128xf32>
    %123 = vector.shape_cast %122 : vector<2x1x128xf32> to vector<2x128xf32>
    %124 = arith.truncf %119 : vector<2x32xf32> to vector<2x32xbf16>
    %cst_31 = arith.constant dense<0.000000e+00> : vector<2x128xf32>
    %125 = tpu.matmul %124, %9, %cst_31 {dimension_numbers = #tpu.dot_dimension_numbers<[1], [0], [0], [1], [0, 0, 1, 1], [], []>} : vector<2x32xbf16>, vector<32x128xbf16>, vector<2x128xf32> -> vector<2x128xf32>
    %126 = arith.addf %123, %125 : vector<2x128xf32>
    %127 = arith.negf %126 : vector<2x128xf32>
    %128 = math.exp %127 : vector<2x128xf32>
    %cst_32 = arith.constant 1.000000e+00 : f32
    %129 = vector.broadcast %cst_32 : f32 to vector<2x128xf32>
    %130 = arith.addf %129, %128 : vector<2x128xf32>
    %131 = arith.divf %129, %130 : vector<2x128xf32>
    %132 = math.tanh %126 : vector<2x128xf32>
    %133 = vector.extract_strided_slice %131 {offsets = [0, 0], sizes = [2, 32], strides = [1, 1]} : vector<2x128xf32> to vector<2x32xf32>
    %134 = vector.extract_strided_slice %131 {offsets = [0, 32], sizes = [2, 32], strides = [1, 1]} : vector<2x128xf32> to vector<2x32xf32>
    %135 = vector.extract_strided_slice %132 {offsets = [0, 64], sizes = [2, 32], strides = [1, 1]} : vector<2x128xf32> to vector<2x32xf32>
    %136 = vector.extract_strided_slice %131 {offsets = [0, 96], sizes = [2, 32], strides = [1, 1]} : vector<2x128xf32> to vector<2x32xf32>
    %137 = arith.mulf %134, %117 : vector<2x32xf32>
    %138 = arith.mulf %133, %135 : vector<2x32xf32>
    %139 = arith.addf %137, %138 : vector<2x32xf32>
    %140 = math.tanh %139 : vector<2x32xf32>
    %141 = arith.mulf %136, %140 : vector<2x32xf32>
    %142 = vector.shape_cast %141 : vector<2x32xf32> to vector<2x1x32xf32>
    %c0_33 = arith.constant 0 : index
    %c5 = arith.constant 5 : index
    %c0_34 = arith.constant 0 : index
    %143 = vector.load %arg8[%c0_33, %c5, %c0_34] : memref<2x8x32xf32, #tpu.memory_space<vmem>>, vector<2x1x32xf32>
    tpu.vector_store %arg8[%c0_33, %c5, %c0_34], %142 {strides = array<i32>} : memref<2x8x32xf32, #tpu.memory_space<vmem>>, vector<2x1x32xf32>,
    %144 = vector.extract_strided_slice %8 {offsets = [0, 6, 0], sizes = [2, 1, 128], strides = [1, 1, 1]} : vector<2x8x128xf32> to vector<2x1x128xf32>
    %145 = vector.shape_cast %144 : vector<2x1x128xf32> to vector<2x128xf32>
    %146 = arith.truncf %141 : vector<2x32xf32> to vector<2x32xbf16>
    %cst_35 = arith.constant dense<0.000000e+00> : vector<2x128xf32>
    %147 = tpu.matmul %146, %9, %cst_35 {dimension_numbers = #tpu.dot_dimension_numbers<[1], [0], [0], [1], [0, 0, 1, 1], [], []>} : vector<2x32xbf16>, vector<32x128xbf16>, vector<2x128xf32> -> vector<2x128xf32>
    %148 = arith.addf %145, %147 : vector<2x128xf32>
    %149 = arith.negf %148 : vector<2x128xf32>
    %150 = math.exp %149 : vector<2x128xf32>
    %cst_36 = arith.constant 1.000000e+00 : f32
    %151 = vector.broadcast %cst_36 : f32 to vector<2x128xf32>
    %152 = arith.addf %151, %150 : vector<2x128xf32>
    %153 = arith.divf %151, %152 : vector<2x128xf32>
    %154 = math.tanh %148 : vector<2x128xf32>
    %155 = vector.extract_strided_slice %153 {offsets = [0, 0], sizes = [2, 32], strides = [1, 1]} : vector<2x128xf32> to vector<2x32xf32>
    %156 = vector.extract_strided_slice %153 {offsets = [0, 32], sizes = [2, 32], strides = [1, 1]} : vector<2x128xf32> to vector<2x32xf32>
    %157 = vector.extract_strided_slice %154 {offsets = [0, 64], sizes = [2, 32], strides = [1, 1]} : vector<2x128xf32> to vector<2x32xf32>
    %158 = vector.extract_strided_slice %153 {offsets = [0, 96], sizes = [2, 32], strides = [1, 1]} : vector<2x128xf32> to vector<2x32xf32>
    %159 = arith.mulf %156, %139 : vector<2x32xf32>
    %160 = arith.mulf %155, %157 : vector<2x32xf32>
    %161 = arith.addf %159, %160 : vector<2x32xf32>
    %162 = math.tanh %161 : vector<2x32xf32>
    %163 = arith.mulf %158, %162 : vector<2x32xf32>
    %164 = vector.shape_cast %163 : vector<2x32xf32> to vector<2x1x32xf32>
    %c0_37 = arith.constant 0 : index
    %c6 = arith.constant 6 : index
    %c0_38 = arith.constant 0 : index
    %165 = vector.load %arg8[%c0_37, %c6, %c0_38] : memref<2x8x32xf32, #tpu.memory_space<vmem>>, vector<2x1x32xf32>
    tpu.vector_store %arg8[%c0_37, %c6, %c0_38], %164 {strides = array<i32>} : memref<2x8x32xf32, #tpu.memory_space<vmem>>, vector<2x1x32xf32>,
    %166 = vector.extract_strided_slice %8 {offsets = [0, 7, 0], sizes = [2, 1, 128], strides = [1, 1, 1]} : vector<2x8x128xf32> to vector<2x1x128xf32>
    %167 = vector.shape_cast %166 : vector<2x1x128xf32> to vector<2x128xf32>
    %168 = arith.truncf %163 : vector<2x32xf32> to vector<2x32xbf16>
    %cst_39 = arith.constant dense<0.000000e+00> : vector<2x128xf32>
    %169 = tpu.matmul %168, %9, %cst_39 {dimension_numbers = #tpu.dot_dimension_numbers<[1], [0], [0], [1], [0, 0, 1, 1], [], []>} : vector<2x32xbf16>, vector<32x128xbf16>, vector<2x128xf32> -> vector<2x128xf32>
    %170 = arith.addf %167, %169 : vector<2x128xf32>
    %171 = arith.negf %170 : vector<2x128xf32>
    %172 = math.exp %171 : vector<2x128xf32>
    %cst_40 = arith.constant 1.000000e+00 : f32
    %173 = vector.broadcast %cst_40 : f32 to vector<2x128xf32>
    %174 = arith.addf %173, %172 : vector<2x128xf32>
    %175 = arith.divf %173, %174 : vector<2x128xf32>
    %176 = math.tanh %170 : vector<2x128xf32>
    %177 = vector.extract_strided_slice %175 {offsets = [0, 0], sizes = [2, 32], strides = [1, 1]} : vector<2x128xf32> to vector<2x32xf32>
    %178 = vector.extract_strided_slice %175 {offsets = [0, 32], sizes = [2, 32], strides = [1, 1]} : vector<2x128xf32> to vector<2x32xf32>
    %179 = vector.extract_strided_slice %176 {offsets = [0, 64], sizes = [2, 32], strides = [1, 1]} : vector<2x128xf32> to vector<2x32xf32>
    %180 = vector.extract_strided_slice %175 {offsets = [0, 96], sizes = [2, 32], strides = [1, 1]} : vector<2x128xf32> to vector<2x32xf32>
    %181 = arith.mulf %178, %161 : vector<2x32xf32>
    %182 = arith.mulf %177, %179 : vector<2x32xf32>
    %183 = arith.addf %181, %182 : vector<2x32xf32>
    %184 = math.tanh %183 : vector<2x32xf32>
    %185 = arith.mulf %180, %184 : vector<2x32xf32>
    %186 = vector.shape_cast %185 : vector<2x32xf32> to vector<2x1x32xf32>
    %c0_41 = arith.constant 0 : index
    %c7 = arith.constant 7 : index
    %c0_42 = arith.constant 0 : index
    %187 = vector.load %arg8[%c0_41, %c7, %c0_42] : memref<2x8x32xf32, #tpu.memory_space<vmem>>, vector<2x1x32xf32>
    tpu.vector_store %arg8[%c0_41, %c7, %c0_42], %186 {strides = array<i32>} : memref<2x8x32xf32, #tpu.memory_space<vmem>>, vector<2x1x32xf32>,
    %c0_43 = arith.constant 0 : index
    %c0_44 = arith.constant 0 : index
    %c0_45 = arith.constant 0 : index
    %188 = vector.load %arg8[%c0_43, %c0_44, %c0_45] : memref<2x8x32xf32, #tpu.memory_space<vmem>>, vector<2x8x32xf32>
    %189 = vector.shape_cast %188 : vector<2x8x32xf32> to vector<16x32xf32>
    %190 = arith.truncf %189 : vector<16x32xf32> to vector<16x32xbf16>
    %c0_46 = arith.constant 0 : index
    %c0_47 = arith.constant 0 : index
    %191 = vector.load %arg5[%c0_46, %c0_47] : memref<32x4xbf16, #tpu.memory_space<vmem>>, vector<32x4xbf16>
    %cst_48 = arith.constant dense<0.000000e+00> : vector<16x4xf32>
    %192 = tpu.matmul %190, %191, %cst_48 {dimension_numbers = #tpu.dot_dimension_numbers<[1], [0], [0], [1], [0, 0, 1, 1], [], []>} : vector<16x32xbf16>, vector<32x4xbf16>, vector<16x4xf32> -> vector<16x4xf32>
    %c0_49 = arith.constant 0 : index
    %c0_50 = arith.constant 0 : index
    %193 = vector.load %arg6[%c0_49, %c0_50] : memref<1x4xf32, #tpu.memory_space<vmem>>, vector<1x4xf32>
    %194 = vector.broadcast %193 : vector<1x4xf32> to vector<16x4xf32>
    %195 = arith.addf %192, %194 : vector<16x4xf32>
    %196 = vector.shape_cast %195 : vector<16x4xf32> to vector<2x8x4xf32>
    %c0_51 = arith.constant 0 : index
    %c0_52 = arith.constant 0 : index
    %c0_53 = arith.constant 0 : index
    %197 = vector.load %arg7[%c0_51, %c0_52, %c0_53] : memref<2x8x4xf32, #tpu.memory_space<vmem>>, vector<2x8x4xf32>
    tpu.vector_store %arg7[%c0_51, %c0_52, %c0_53], %196 {strides = array<i32>} : memref<2x8x4xf32, #tpu.memory_space<vmem>>, vector<2x8x4xf32>,
    return
  }
  func.func @transform_0(%arg0: i32) -> (i32, i32, i32) {
    %c0_i32 = arith.constant 0 : i32
    %c0_i32_0 = arith.constant 0 : i32
    %c0_i32_1 = arith.constant 0 : i32
    %c0_i32_2 = arith.constant 0 : i32
    return %c0_i32, %c0_i32_0, %c0_i32_1 : i32, i32, i32
  }
  func.func @transform_1(%arg0: i32) -> (i32, i32) {
    %c0_i32 = arith.constant 0 : i32
    %c0_i32_0 = arith.constant 0 : i32
    %c0_i32_1 = arith.constant 0 : i32
    return %c0_i32, %c0_i32_0 : i32, i32
  }
  func.func @transform_2(%arg0: i32) -> (i32, i32) {
    %c0_i32 = arith.constant 0 : i32
    %c0_i32_0 = arith.constant 0 : i32
    %c0_i32_1 = arith.constant 0 : i32
    return %c0_i32, %c0_i32_0 : i32, i32
  }
  func.func @transform_3(%arg0: i32) -> (i32, i32) {
    %c0_i32 = arith.constant 0 : i32
    %c0_i32_0 = arith.constant 0 : i32
    %c0_i32_1 = arith.constant 0 : i32
    return %c0_i32, %c0_i32_0 : i32, i32
  }
  func.func @transform_4(%arg0: i32) -> (i32, i32) {
    %c0_i32 = arith.constant 0 : i32
    %c0_i32_0 = arith.constant 0 : i32
    %c0_i32_1 = arith.constant 0 : i32
    return %c0_i32, %c0_i32_0 : i32, i32
  }
  func.func @transform_5(%arg0: i32) -> (i32, i32) {
    %c0_i32 = arith.constant 0 : i32
    %c0_i32_0 = arith.constant 0 : i32
    %c0_i32_1 = arith.constant 0 : i32
    return %c0_i32, %c0_i32_0 : i32, i32
  }
  func.func @transform_6(%arg0: i32) -> (i32, i32, i32) {
    %c0_i32 = arith.constant 0 : i32
    %c0_i32_0 = arith.constant 0 : i32
    %c0_i32_1 = arith.constant 0 : i32
    %c0_i32_2 = arith.constant 0 : i32
    return %c0_i32, %c0_i32_0, %c0_i32_1 : i32, i32, i32
  }
}

</mosaic_0001>

<bundles_post_ra>
// kernel: nblstm_forward.1
= control target key start
LH: loop header
LB: loop body
LE: loop exit
PB: predicated region body
PF: predicated region fallthrough
CT: control target
= control target key end

     0   :  { %vm39_vm0 = vcmask 1041408   ;;  %v1447_v0 = vmov 0.0   ;;  %vm1448_vm1 = vmmov 0   ;;  %vm35_vm2 = vcmask 31744   ;;  %s1450_s30 = smov 64   ;;  %s1786_s1 = inlined_call_operand.vmem [shape: bf16[4,128], index: 1, kind: input, shape index: {}]   ;;  %s1787_s2 = inlined_call_operand.vmem [shape: bf16[32,128], index: 2, kind: input, shape index: {}]   ;;  %s1788_s0 = inlined_call_operand.vmem [shape: f32[2,8,4], index: 0, kind: input, shape index: {}]   ;;  %s1789_s3 = inlined_call_operand.vmem [shape: f32[1,128], index: 3, kind: input, shape index: {}]   ;;  %s1790_s4 = inlined_call_operand.vmem [shape: bf16[32,4], index: 4, kind: input, shape index: {}]   ;;  %s1791_s5 = inlined_call_operand.vmem [shape: f32[1,4], index: 5, kind: input, shape index: {}]   ;;  %s1792_s6 = inlined_call_operand.vmem [shape: f32[2,8,4], index: 6, kind: output, shape index: {}]  }
   0x1   :  { %1232 = vmatprep.subr.bf16.mxu0 %v1447_v0  ;;  %v27_v1 = vld [vmem:[%s1786_s1] sm:$0x3]  ;;  %1238 = vmatprep.subr.bf16.mxu1 %v1447_v0  ;;  %v25_v5 = vld [vmem:[%s1788_s0 + $0x8] sm:$0xff]  ;;  %v1449_v8 = vmov 0   ;;  %vm216_vm3 = vcmask 1041409   ;;  %vm100_vm4 = vcmask 261120  }
   0x2   :  { %v41_v2 = vsel %vm39_vm0, %v27_v1, 0  ;;  %v1495_v3 = vld [vmem:[%s1787_s2] sm:$0xff]   ;;  %1234 = vmatprep.mubr.msk.bf16.mxu0 %vm1448_vm1, %v1447_v0  ;;  %1242 = vmatprep.mubr.msk.bf16.mxu1 %vm1448_vm1, %v1447_v0  ;;  %v1511_v7 = vld [vmem:[%s1787_s2 + $0x8] sm:$0xff]   ;;  %vm206_vm5 = vcmask 253952   ;;  %vm332_vm6 = vcmask 254977   ;;  %vm458_vm7 = vcmask 256002  }
   0x3   :  { %v24_v4 = vld [vmem:[%s1788_s0] sm:$0xff]  ;;  %1233 = vmatpush3.bf16.msra.mxu0 %v41_v2  ;;  %1239 = vmatpush3.bf16.msra.mxu1 %v1495_v3  ;;  %vm585_vm8 = vcmask 257027   ;;  %vm712_vm9 = vcmask 258052   ;;  %vm839_vm10 = vcmask 259077   ;;  %vm966_vm11 = vcmask 260102  }
   0x4   :  { %v26_v6 = vpack.c.bf16 %v25_v5, %v24_v4  ;;  %1246 = vmatprep.subr.bf16.mxu0 %v1447_v0  ;;  %1240 = vmatprep.subr.bf16.mxu1 %v1447_v0  ;;  %v1172_v12 = vld [vmem:[%s1789_s3] ss:$0 sm:$0xff]  ;;  %s1451_s3 = smov 32   ;;  %vm1093_vm12 = vcmask 261127  }
   0x6   :  { %1235 = vmatmul.mubr.msk.bf16.vlgmr.msra.gmra.mrb[0].mxu0 %vm35_vm2, %v26_v6 }
   0x7   :  { %1247 = vmatpush3.bf16.msra.mxu0 %v1495_v3  ;;  %1250 = vmatprep.mubr.msk.bf16.mxu0 %vm1448_vm1, %v1447_v0 }
   0x8   :  { %1241 = vmatpush3.bf16.msra.mxu1 %v1511_v7  ;;  %1248 = vmatprep.subr.bf16.mxu0 %v1447_v0 }
   0x9   :  { %1254 = vmatprep.subr.bf16.mxu1 %v1447_v0 }
   0xb   :  { %1243 = vmatmul.mubr.bf16.vlgmr.msra.gmra.mrb[0].mxu1 %v1449_v8  ;;  %1249 = vmatpush3.bf16.msra.mxu0 %v1511_v7 }
   0xc   :  { %1255 = vmatpush3.bf16.msra.mxu1 %v1495_v3  ;;  %1258 = vmatprep.mubr.msk.bf16.mxu1 %vm1448_vm1, %v1447_v0 }
   0xd   :  { %1256 = vmatprep.subr.bf16.mxu1 %v1447_v0  ;;  %1262 = vmatprep.subr.bf16.mxu0 %v1447_v0 }
  0x10   :  { %1257 = vmatpush3.bf16.msra.mxu1 %v1511_v7 }
  0x11   :  { %1270 = vmatprep.subr.bf16.mxu1 %v1447_v0 }
  0xd9   :  { %v77_v9 = vpop.f32.mrb[0].mxu0 }
  0xda   :  { %v1236_v10 = vpop.f32.mrb[1].mxu0  ;;  %v1535_v18 = vadd.f32 %v1172_v12, %v77_v9 }
  0xdb   :  { %v80_v11 = vpop.f32.mrb[2].mxu0 }
  0xdc   :  { %v1237_v13 = vpop.f32.mrb[3].mxu0  ;;  %v1533_v15 = vadd.f32 %v1172_v12, %v80_v11 }
  0xde   :  { %v138_v14 = vpop.f32.mrb[0].mxu1 }
  0xdf   :  { %v145_v16 = vrot.slane %v138_v14, 1  ;;  %v1244_v17 = vpop.f32.mrb[1].mxu1  ;;  %v148_v22 = vadd.f32 %v138_v14, %v1535_v18 }
  0xe0   :  { %v141_v19 = vpop.f32.mrb[2].mxu1 }
  0xe1   :  { %v149_v20 = vadd.f32 %v145_v16, %v1533_v15  ;;  %v1245_v21 = vpop.f32.mrb[3].mxu1  ;;  %v1176_v26 = vmul.f32 -1.442695, %v148_v22 }
  0xe3   :  { %1319 = vtanh.f32 %v149_v20  ;;  %v1177_v25 = vmul.f32 -1.442695, %v149_v20 }
  0xe4   :  { %1321 = vtanh.f32 %v148_v22 }
  0xe5   :  { %1323 = vpow2.f32 %v1177_v25 }
  0xe6   :  { %1325 = vpow2.f32 %v1176_v26 }
  0xed   :  { %v1320_v23 = vpop.eup %1319 }
  0xee   :  { %170 = vrot.lane.b32.xlu0 %v1320_v23, %s1450_s30  ;;  %v1322_v24 = vpop.eup %1321 }
  0xef   :  { %v1324_v27 = vpop.eup %1323 }
  0xf0   :  { %v157_v28 = vadd.f32 1.0, %v1324_v27  ;;  %v1326_v29 = vpop.eup %1325 }
  0xf1   :  { %v156_v30 = vadd.f32 1.0, %v1326_v29 }
  0xf2   :  { %168 = vrot.lane.b32.xlu0 %v1322_v24, %s1450_s30  ;;  %1327 = vrcp.f32 %v157_v28 }
  0xf3   :  { %1329 = vrcp.f32 %v156_v30 }
  0xfc   :  { %v1328_v31 = vpop.eup %1327 }
  0xfd   :  { %v1330_v34 = vpop.eup %1329  ;;  %v165_v37 = vmul.f32 0.0, %v1328_v31 }
  0xfe   :  { %v164_v40 = vmul.f32 0.0, %v1330_v34 }
 0x160   :  { %v171_v32 = vpop.permute.xlu0 %170 }
 0x161   :  { %v175_v33 = vmul.f32 %v1328_v31, %v171_v32 }
 0x163   :  { %180 = vrot.lane.b32.xlu1 %v175_v33, %s1451_s3 }
 0x164   :  { %v169_v35 = vpop.permute.xlu0 %168 }
 0x165   :  { %v174_v36 = vmul.f32 %v1330_v34, %v169_v35 }
 0x167   :  { %178 = vrot.lane.b32.xlu1 %v174_v36, %s1451_s3 }
 0x1d5   :  { %v181_v38 = vpop.permute.xlu1 %180 }
 0x1d6   :  { %v1543_v39 = vadd.f32 %v181_v38, %v165_v37 }
 0x1d8   :  { %1331 = vtanh.f32 %v1543_v39  ;;  %v287_v19 = vrot.slane %v1543_v39, 7 }
 0x1d9   :  { %v179_v41 = vpop.permute.xlu1 %178 }
 0x1da   :  { %v1546_v42 = vadd.f32 %v179_v41, %v164_v40 }
 0x1dc   :  { %1333 = vtanh.f32 %v1546_v42  ;;  %v286_v21 = vrot.slane %v1546_v42, 7 }
 0x1e2   :  { %v1332_v43 = vpop.eup %1331 }
 0x1e3   :  { %192 = vrot.lane.b32.xlu0 %v1332_v43, %s1450_s30 }
 0x1e6   :  { %v1334_v44 = vpop.eup %1333 }
 0x1e7   :  { %190 = vrot.lane.b32.xlu1 %v1334_v44, %s1450_s30 }
 0x255   :  { %v193_v45 = vpop.permute.xlu0 %192 }
 0x256   :  { %v1551_v46 = vmul.f32 %v1328_v31, %v193_v45 }
 0x258   :  { %v210_v47 = vpack.c.bf16 %v1551_v46, %v1551_v46 }
 0x259   :  { %v191_v48 = vpop.permute.xlu1 %190 }
 0x25a   :  { %v214_v49 = vunpack.c.l.b16 %v210_v47  ;;  %v1555_v50 = vmul.f32 %v1330_v34, %v191_v48 }
 0x25c   :  { %v209_v51 = vpack.c.bf16 %v1555_v50, %v1555_v50  ;;  %v215_v52 = vrot.slane %v214_v49, 7 }
 0x25e   :  { %v213_v53 = vunpack.c.l.b16 %v209_v51 }
 0x260   :  { %v217_v54 = vsel %vm216_vm3, %v215_v52, %v213_v53 }
 0x261   :  { %v218_v55 = vpack.c.b16 %v217_v54, %v217_v54 }
 0x263   :  { %219 = vrot.lane.b32.xlu0 %v218_v55, %s1451_s3 }
 0x2d5   :  { %v220_v56 = vpop.permute.xlu0 %219 }
 0x2d6   :  { %1251 = vmatmul.mubr.msk.bf16.vlgmr.msra.gmra.mrb[4].mxu0 %vm100_vm4, %v220_v56 }
 0x2d7   :  { %1263 = vmatpush3.bf16.msra.mxu0 %v1495_v3  ;;  %1266 = vmatprep.mubr.msk.bf16.mxu0 %vm1448_vm1, %v1447_v0 }
 0x2d8   :  { %1264 = vmatprep.subr.bf16.mxu0 %v1447_v0 }
 0x2db   :  { %1265 = vmatpush3.bf16.msra.mxu0 %v1511_v7 }
 0x2dc   :  { %1278 = vmatprep.subr.bf16.mxu0 %v1447_v0 }
 0x3a9   :  { %v258_v57 = vpop.f32.mrb[4].mxu0 }
 0x3aa   :  { %v265_v58 = vrot.slane %v258_v57, 7  ;;  %v269_v59 = vadd.f32 %v258_v57, %v1533_v15  ;;  %v1252_v60 = vpop.f32.mrb[5].mxu0 }
 0x3ab   :  { %v261_v61 = vpop.f32.mrb[6].mxu0 }
 0x3ac   :  { %v268_v62 = vadd.f32 %v265_v58, %v1535_v18  ;;  %1335 = vtanh.f32 %v269_v59  ;;  %v1253_v63 = vpop.f32.mrb[7].mxu0  ;;  %v1180_v4 = vmul.f32 -1.442695, %v269_v59 }
 0x3ae   :  { %1337 = vtanh.f32 %v268_v62  ;;  %v1179_v5 = vmul.f32 -1.442695, %v268_v62 }
 0x3af   :  { %1339 = vpow2.f32 %v1180_v4 }
 0x3b0   :  { %1341 = vpow2.f32 %v1179_v5 }
 0x3b6   :  { %v1336_v1 = vpop.eup %1335 }
 0x3b7   :  { %296 = vrot.lane.b32.xlu0 %v1336_v1, %s1450_s30 }
 0x3b8   :  { %v1338_v2 = vpop.eup %1337 }
 0x3b9   :  { %294 = vrot.lane.b32.xlu1 %v1338_v2, %s1450_s30  ;;  %v1340_v6 = vpop.eup %1339 }
 0x3ba   :  { %v1342_v8 = vpop.eup %1341  ;;  %v277_v9 = vadd.f32 1.0, %v1340_v6 }
 0x3bb   :  { %v276_v10 = vadd.f32 1.0, %v1342_v8 }
 0x3bc   :  { %1343 = vrcp.f32 %v277_v9 }
 0x3bd   :  { %1345 = vrcp.f32 %v276_v10 }
 0x3c6   :  { %v1344_v11 = vpop.eup %1343 }
 0x3c7   :  { %v1346_v14 = vpop.eup %1345  ;;  %v291_v20 = vmul.f32 %v1344_v11, %v287_v19 }
 0x3c8   :  { %v290_v24 = vmul.f32 %v1346_v14, %v286_v21 }
 0x429   :  { %v297_v12 = vpop.permute.xlu0 %296 }
 0x42a   :  { %v301_v13 = vmul.f32 %v1344_v11, %v297_v12 }
 0x42b   :  { %v295_v16 = vpop.permute.xlu1 %294 }
 0x42c   :  { %306 = vrot.lane.b32.xlu0 %v301_v13, %s1451_s3  ;;  %v300_v17 = vmul.f32 %v1346_v14, %v295_v16 }
 0x42e   :  { %304 = vrot.lane.b32.xlu1 %v300_v17, %s1451_s3 }
 0x49e   :  { %v307_v22 = vpop.permute.xlu0 %306 }
 0x49f   :  { %v1576_v23 = vadd.f32 %v307_v22, %v291_v20 }
 0x4a0   :  { %v305_v25 = vpop.permute.xlu1 %304 }
 0x4a1   :  { %1347 = vtanh.f32 %v1576_v23  ;;  %v310_v26 = vadd.f32 %v305_v25, %v290_v24  ;;  %v413_v4 = vrot.slane %v1576_v23, 7 }
 0x4a3   :  { %1349 = vtanh.f32 %v310_v26  ;;  %v412_v2 = vrot.slane %v310_v26, 7 }
 0x4ab   :  { %v1348_v27 = vpop.eup %1347 }
 0x4ac   :  { %318 = vrot.lane.b32.xlu0 %v1348_v27, %s1450_s30 }
 0x4ad   :  { %v1350_v28 = vpop.eup %1349 }
 0x4ae   :  { %316 = vrot.lane.b32.xlu1 %v1350_v28, %s1450_s30 }
 0x51e   :  { %v319_v29 = vpop.permute.xlu0 %318 }
 0x51f   :  { %v1581_v30 = vmul.f32 %v1344_v11, %v319_v29 }
 0x520   :  { %v317_v31 = vpop.permute.xlu1 %316 }
 0x521   :  { %v1583_v32 = vmul.f32 %v1346_v14, %v317_v31  ;;  %v336_v33 = vpack.c.bf16 %v1581_v30, %v1581_v30 }
 0x523   :  { %v335_v34 = vpack.c.bf16 %v1583_v32, %v1583_v32  ;;  %v340_v36 = vunpack.c.l.b16 %v336_v33 }
 0x525   :  { %v339_v35 = vunpack.c.l.b16 %v335_v34 }
 0x527   :  { %v341_v37 = vrot.slane %v339_v35, 1 }
 0x529   :  { %v342_v38 = vsel %vm216_vm3, %v340_v36, %v341_v37 }
 0x52a   :  { %v343_v39 = vpack.c.b16 %v342_v38, %v342_v38 }
 0x52c   :  { %344 = vrot.lane.b32.xlu1 %v343_v39, %s1451_s3 }
 0x59e   :  { %v345_v40 = vpop.permute.xlu1 %344 }
 0x59f   :  { %1259 = vmatmul.mubr.msk.bf16.vlgmr.msra.gmra.mrb[4].mxu1 %vm100_vm4, %v345_v40 }
 0x5a0   :  { %1271 = vmatpush3.bf16.msra.mxu1 %v1495_v3  ;;  %1274 = vmatprep.mubr.msk.bf16.mxu1 %vm1448_vm1, %v1447_v0 }
 0x5a1   :  { %1272 = vmatprep.subr.bf16.mxu1 %v1447_v0 }
 0x5a4   :  { %1273 = vmatpush3.bf16.msra.mxu1 %v1511_v7 }
 0x5a5   :  { %1286 = vmatprep.subr.bf16.mxu1 %v1447_v0 }
 0x672   :  { %v383_v41 = vpop.f32.mrb[4].mxu1 }
 0x673   :  { %v390_v42 = vrot.slane %v383_v41, 6  ;;  %v391_v43 = vrot.slane %v383_v41, 7  ;;  %v1260_v44 = vpop.f32.mrb[5].mxu1 }
 0x674   :  { %v386_v45 = vpop.f32.mrb[6].mxu1 }
 0x675   :  { %v394_v47 = vadd.f32 %v390_v42, %v1535_v18  ;;  %v395_v48 = vadd.f32 %v391_v43, %v1533_v15  ;;  %v1261_v49 = vpop.f32.mrb[7].mxu1 }
 0x677   :  { %1351 = vtanh.f32 %v394_v47  ;;  %v1182_v53 = vmul.f32 -1.442695, %v394_v47  ;;  %v1183_v54 = vmul.f32 -1.442695, %v395_v48 }
 0x678   :  { %1353 = vtanh.f32 %v395_v48 }
 0x679   :  { %1355 = vpow2.f32 %v1182_v53 }
 0x67a   :  { %1357 = vpow2.f32 %v1183_v54 }
 0x681   :  { %v1352_v51 = vpop.eup %1351 }
 0x682   :  { %v1354_v52 = vpop.eup %1353  ;;  %420 = vrot.lane.b32.xlu0 %v1352_v51, %s1450_s30 }
 0x683   :  { %422 = vrot.lane.b32.xlu1 %v1354_v52, %s1450_s30  ;;  %v1356_v55 = vpop.eup %1355 }
 0x684   :  { %v1358_v56 = vpop.eup %1357  ;;  %v402_v57 = vadd.f32 1.0, %v1356_v55 }
 0x685   :  { %v403_v58 = vadd.f32 1.0, %v1358_v56 }
 0x686   :  { %1359 = vrcp.f32 %v402_v57 }
 0x687   :  { %1361 = vrcp.f32 %v403_v58 }
 0x690   :  { %v1360_v59 = vpop.eup %1359 }
 0x691   :  { %v1362_v61 = vpop.eup %1361  ;;  %v416_v5 = vmul.f32 %v1360_v59, %v412_v2 }
 0x692   :  { %v417_v6 = vmul.f32 %v1362_v61, %v413_v4 }
 0x6f4   :  { %v421_v60 = vpop.permute.xlu0 %420 }
 0x6f5   :  { %v423_v62 = vpop.permute.xlu1 %422  ;;  %v426_v63 = vmul.f32 %v1360_v59, %v421_v60 }
 0x6f6   :  { %v427_v1 = vmul.f32 %v1362_v61, %v423_v62 }
 0x6f7   :  { %430 = vrot.lane.b32.xlu0 %v426_v63, %s1451_s3 }
 0x6f8   :  { %432 = vrot.lane.b32.xlu1 %v427_v1, %s1451_s3 }
 0x769   :  { %v431_v8 = vpop.permute.xlu0 %430 }
 0x76a   :  { %v433_v9 = vpop.permute.xlu1 %432  ;;  %v1605_v10 = vadd.f32 %v431_v8, %v416_v5 }
 0x76b   :  { %v1607_v11 = vadd.f32 %v433_v9, %v417_v6 }
 0x76c   :  { %1363 = vtanh.f32 %v1605_v10  ;;  %v539_v55 = vrot.slane %v1605_v10, 7 }
 0x76d   :  { %1365 = vtanh.f32 %v1607_v11  ;;  %v540_v56 = vrot.slane %v1607_v11, 7 }
 0x776   :  { %v1364_v12 = vpop.eup %1363 }
 0x777   :  { %v1366_v13 = vpop.eup %1365  ;;  %442 = vrot.lane.b32.xlu0 %v1364_v12, %s1450_s30 }
 0x778   :  { %444 = vrot.lane.b32.xlu1 %v1366_v13, %s1450_s30 }
 0x7e9   :  { %v443_v14 = vpop.permute.xlu0 %442 }
 0x7ea   :  { %v445_v16 = vpop.permute.xlu1 %444  ;;  %v1613_v17 = vmul.f32 %v1360_v59, %v443_v14 }
 0x7eb   :  { %v1615_v19 = vmul.f32 %v1362_v61, %v445_v16 }
 0x7ec   :  { %v461_v20 = vpack.c.bf16 %v1613_v17, %v1613_v17 }
 0x7ed   :  { %v462_v21 = vpack.c.bf16 %v1615_v19, %v1615_v19 }
 0x7ee   :  { %v465_v22 = vunpack.c.l.b16 %v461_v20 }
 0x7ef   :  { %v466_v23 = vunpack.c.l.b16 %v462_v21 }
 0x7f0   :  { %v467_v24 = vrot.slane %v465_v22, 2 }
 0x7f1   :  { %v468_v25 = vrot.slane %v466_v23, 1 }
 0x7f3   :  { %v469_v26 = vsel %vm216_vm3, %v468_v25, %v467_v24 }
 0x7f4   :  { %v470_v27 = vpack.c.b16 %v469_v26, %v469_v26 }
 0x7f6   :  { %471 = vrot.lane.b32.xlu0 %v470_v27, %s1451_s3 }
 0x868   :  { %v472_v28 = vpop.permute.xlu0 %471 }
 0x869   :  { %1267 = vmatmul.mubr.msk.bf16.vlgmr.msra.gmra.mrb[8].mxu0 %vm100_vm4, %v472_v28 }
 0x86a   :  { %1279 = vmatpush3.bf16.msra.mxu0 %v1495_v3  ;;  %1282 = vmatprep.mubr.msk.bf16.mxu0 %vm1448_vm1, %v1447_v0 }
 0x86b   :  { %1280 = vmatprep.subr.bf16.mxu0 %v1447_v0 }
 0x86e   :  { %1281 = vmatpush3.bf16.msra.mxu0 %v1511_v7 }
 0x86f   :  { %1294 = vmatprep.subr.bf16.mxu0 %v1447_v0 }
 0x93c   :  { %v510_v29 = vpop.f32.mrb[8].mxu0 }
 0x93d   :  { %v517_v31 = vrot.slane %v510_v29, 5  ;;  %v518_v33 = vrot.slane %v510_v29, 6  ;;  %v1268_v34 = vpop.f32.mrb[9].mxu0 }
 0x93e   :  { %v513_v35 = vpop.f32.mrb[10].mxu0 }
 0x93f   :  { %v521_v36 = vadd.f32 %v517_v31, %v1535_v18  ;;  %v522_v37 = vadd.f32 %v518_v33, %v1533_v15  ;;  %v1269_v38 = vpop.f32.mrb[11].mxu0 }
 0x941   :  { %1367 = vtanh.f32 %v521_v36  ;;  %v1185_v41 = vmul.f32 -1.442695, %v521_v36  ;;  %v1186_v42 = vmul.f32 -1.442695, %v522_v37 }
 0x942   :  { %1369 = vtanh.f32 %v522_v37 }
 0x943   :  { %1371 = vpow2.f32 %v1185_v41 }
 0x944   :  { %1373 = vpow2.f32 %v1186_v42 }
 0x94b   :  { %v1368_v39 = vpop.eup %1367 }
 0x94c   :  { %v1370_v40 = vpop.eup %1369  ;;  %547 = vrot.lane.b32.xlu1 %v1368_v39, %s1450_s30 }
 0x94d   :  { %549 = vrot.lane.b32.xlu0 %v1370_v40, %s1450_s30  ;;  %v1372_v43 = vpop.eup %1371 }
 0x94e   :  { %v1374_v44 = vpop.eup %1373  ;;  %v529_v45 = vadd.f32 1.0, %v1372_v43 }
 0x94f   :  { %v530_v47 = vadd.f32 1.0, %v1374_v44 }
 0x950   :  { %1375 = vrcp.f32 %v529_v45 }
 0x951   :  { %1377 = vrcp.f32 %v530_v47 }
 0x95a   :  { %v1376_v48 = vpop.eup %1375 }
 0x95b   :  { %v1378_v51 = vpop.eup %1377  ;;  %v543_v57 = vmul.f32 %v1376_v48, %v539_v55 }
 0x95c   :  { %v544_v58 = vmul.f32 %v1378_v51, %v540_v56 }
 0x9be   :  { %v548_v49 = vpop.permute.xlu1 %547 }
 0x9bf   :  { %v550_v52 = vpop.permute.xlu0 %549  ;;  %v553_v53 = vmul.f32 %v1376_v48, %v548_v49 }
 0x9c0   :  { %v554_v54 = vmul.f32 %v1378_v51, %v550_v52 }
 0x9c1   :  { %557 = vrot.lane.b32.xlu1 %v553_v53, %s1451_s3 }
 0x9c2   :  { %559 = vrot.lane.b32.xlu0 %v554_v54, %s1451_s3 }
 0xa33   :  { %v558_v59 = vpop.permute.xlu1 %557 }
 0xa34   :  { %v560_v60 = vpop.permute.xlu0 %559  ;;  %v1638_v61 = vadd.f32 %v558_v59, %v543_v57 }
 0xa35   :  { %v1640_v62 = vadd.f32 %v560_v60, %v544_v58 }
 0xa36   :  { %1379 = vtanh.f32 %v1638_v61  ;;  %v666_v45 = vrot.slane %v1638_v61, 7 }
 0xa37   :  { %1381 = vtanh.f32 %v1640_v62  ;;  %v667_v47 = vrot.slane %v1640_v62, 7 }
 0xa40   :  { %v1380_v63 = vpop.eup %1379 }
 0xa41   :  { %v1382_v1 = vpop.eup %1381  ;;  %569 = vrot.lane.b32.xlu1 %v1380_v63, %s1450_s30 }
 0xa42   :  { %571 = vrot.lane.b32.xlu0 %v1382_v1, %s1450_s30 }
 0xab3   :  { %v570_v2 = vpop.permute.xlu1 %569 }
 0xab4   :  { %v572_v4 = vpop.permute.xlu0 %571  ;;  %v1646_v5 = vmul.f32 %v1376_v48, %v570_v2 }
 0xab5   :  { %v1648_v6 = vmul.f32 %v1378_v51, %v572_v4 }
 0xab6   :  { %v588_v8 = vpack.c.bf16 %v1646_v5, %v1646_v5 }
 0xab7   :  { %v589_v9 = vpack.c.bf16 %v1648_v6, %v1648_v6 }
 0xab8   :  { %v592_v10 = vunpack.c.l.b16 %v588_v8 }
 0xab9   :  { %v593_v11 = vunpack.c.l.b16 %v589_v9 }
 0xaba   :  { %v594_v12 = vrot.slane %v592_v10, 3 }
 0xabb   :  { %v595_v13 = vrot.slane %v593_v11, 2 }
 0xabd   :  { %v596_v14 = vsel %vm216_vm3, %v595_v13, %v594_v12 }
 0xabe   :  { %v597_v16 = vpack.c.b16 %v596_v14, %v596_v14 }
 0xac0   :  { %598 = vrot.lane.b32.xlu1 %v597_v16, %s1451_s3 }
 0xb32   :  { %v599_v20 = vpop.permute.xlu1 %598 }
 0xb33   :  { %1275 = vmatmul.mubr.msk.bf16.vlgmr.msra.gmra.mrb[8].mxu1 %vm100_vm4, %v599_v20 }
 0xb34   :  { %1287 = vmatpush3.bf16.msra.mxu1 %v1495_v3  ;;  %1290 = vmatprep.mubr.msk.bf16.mxu1 %vm1448_vm1, %v1447_v0 }
 0xb35   :  { %1288 = vmatprep.subr.bf16.mxu1 %v1447_v0 }
 0xb38   :  { %1289 = vmatpush3.bf16.msra.mxu1 %v1511_v7 }
 0xb39   :  { %1302 = vmatprep.subr.bf16.mxu1 %v1447_v0 }
 0xc06   :  { %v637_v21 = vpop.f32.mrb[8].mxu1 }
 0xc07   :  { %v644_v22 = vrot.slane %v637_v21, 4  ;;  %v645_v23 = vrot.slane %v637_v21, 5  ;;  %v1276_v24 = vpop.f32.mrb[9].mxu1 }
 0xc08   :  { %v640_v25 = vpop.f32.mrb[10].mxu1 }
 0xc09   :  { %v648_v26 = vadd.f32 %v644_v22, %v1535_v18  ;;  %v649_v27 = vadd.f32 %v645_v23, %v1533_v15  ;;  %v1277_v28 = vpop.f32.mrb[11].mxu1 }
 0xc0b   :  { %1383 = vtanh.f32 %v648_v26  ;;  %v1188_v33 = vmul.f32 -1.442695, %v648_v26  ;;  %v1189_v34 = vmul.f32 -1.442695, %v649_v27 }
 0xc0c   :  { %1385 = vtanh.f32 %v649_v27 }
 0xc0d   :  { %1387 = vpow2.f32 %v1188_v33 }
 0xc0e   :  { %1389 = vpow2.f32 %v1189_v34 }
 0xc15   :  { %v1384_v29 = vpop.eup %1383 }
 0xc16   :  { %v1386_v31 = vpop.eup %1385  ;;  %674 = vrot.lane.b32.xlu0 %v1384_v29, %s1450_s30 }
 0xc17   :  { %676 = vrot.lane.b32.xlu1 %v1386_v31, %s1450_s30  ;;  %v1388_v35 = vpop.eup %1387 }
 0xc18   :  { %v1390_v36 = vpop.eup %1389  ;;  %v656_v37 = vadd.f32 1.0, %v1388_v35 }
 0xc19   :  { %v657_v38 = vadd.f32 1.0, %v1390_v36 }
 0xc1a   :  { %1391 = vrcp.f32 %v656_v37 }
 0xc1b   :  { %1393 = vrcp.f32 %v657_v38 }
 0xc24   :  { %v1392_v39 = vpop.eup %1391 }
 0xc25   :  { %v1394_v41 = vpop.eup %1393  ;;  %v670_v48 = vmul.f32 %v1392_v39, %v666_v45 }
 0xc26   :  { %v671_v49 = vmul.f32 %v1394_v41, %v667_v47 }
 0xc88   :  { %v675_v40 = vpop.permute.xlu0 %674 }
 0xc89   :  { %v677_v42 = vpop.permute.xlu1 %676  ;;  %v680_v43 = vmul.f32 %v1392_v39, %v675_v40 }
 0xc8a   :  { %v681_v44 = vmul.f32 %v1394_v41, %v677_v42 }
 0xc8b   :  { %684 = vrot.lane.b32.xlu0 %v680_v43, %s1451_s3 }
 0xc8c   :  { %686 = vrot.lane.b32.xlu1 %v681_v44, %s1451_s3 }
 0xcfd   :  { %v685_v51 = vpop.permute.xlu0 %684 }
 0xcfe   :  { %v687_v52 = vpop.permute.xlu1 %686  ;;  %v690_v53 = vadd.f32 %v685_v51, %v670_v48 }
 0xcff   :  { %v691_v54 = vadd.f32 %v687_v52, %v671_v49 }
 0xd00   :  { %1395 = vtanh.f32 %v690_v53  ;;  %v793_v37 = vrot.slane %v690_v53, 7 }
 0xd01   :  { %1397 = vtanh.f32 %v691_v54  ;;  %v794_v38 = vrot.slane %v691_v54, 7 }
 0xd0a   :  { %v1396_v55 = vpop.eup %1395 }
 0xd0b   :  { %v1398_v56 = vpop.eup %1397  ;;  %696 = vrot.lane.b32.xlu0 %v1396_v55, %s1450_s30 }
 0xd0c   :  { %698 = vrot.lane.b32.xlu1 %v1398_v56, %s1450_s30 }
 0xd7d   :  { %v697_v57 = vpop.permute.xlu0 %696 }
 0xd7e   :  { %v699_v58 = vpop.permute.xlu1 %698  ;;  %v1673_v59 = vmul.f32 %v1392_v39, %v697_v57 }
 0xd7f   :  { %v1675_v60 = vmul.f32 %v1394_v41, %v699_v58 }
 0xd80   :  { %v715_v61 = vpack.c.bf16 %v1673_v59, %v1673_v59 }
 0xd81   :  { %v716_v62 = vpack.c.bf16 %v1675_v60, %v1675_v60 }
 0xd82   :  { %v719_v63 = vunpack.c.l.b16 %v715_v61 }
 0xd83   :  { %v720_v1 = vunpack.c.l.b16 %v716_v62 }
 0xd84   :  { %v721_v2 = vrot.slane %v719_v63, 4 }
 0xd85   :  { %v722_v4 = vrot.slane %v720_v1, 3 }
 0xd87   :  { %v723_v8 = vsel %vm216_vm3, %v722_v4, %v721_v2 }
 0xd88   :  { %v724_v9 = vpack.c.b16 %v723_v8, %v723_v8 }
 0xd8a   :  { %725 = vrot.lane.b32.xlu0 %v724_v9, %s1451_s3 }
 0xdfc   :  { %v726_v10 = vpop.permute.xlu0 %725 }
 0xdfd   :  { %1283 = vmatmul.mubr.msk.bf16.vlgmr.msra.gmra.mrb[12].mxu0 %vm100_vm4, %v726_v10 }
 0xdfe   :  { %1295 = vmatpush3.bf16.msra.mxu0 %v1495_v3  ;;  %1298 = vmatprep.mubr.msk.bf16.mxu0 %vm1448_vm1, %v1447_v0 }
 0xdff   :  { %1296 = vmatprep.subr.bf16.mxu0 %v1447_v0 }
 0xe02   :  { %1297 = vmatpush3.bf16.msra.mxu0 %v1511_v7 }
 0xed0   :  { %v764_v11 = vpop.f32.mrb[12].mxu0 }
 0xed1   :  { %v771_v12 = vrot.slane %v764_v11, 3  ;;  %v772_v13 = vrot.slane %v764_v11, 4  ;;  %v1284_v14 = vpop.f32.mrb[13].mxu0 }
 0xed2   :  { %v767_v16 = vpop.f32.mrb[14].mxu0 }
 0xed3   :  { %v775_v20 = vadd.f32 %v771_v12, %v1535_v18  ;;  %v776_v21 = vadd.f32 %v772_v13, %v1533_v15  ;;  %v1285_v22 = vpop.f32.mrb[15].mxu0 }
 0xed5   :  { %1399 = vtanh.f32 %v775_v20  ;;  %v1191_v24 = vmul.f32 -1.442695, %v775_v20  ;;  %v1192_v7 = vmul.f32 -1.442695, %v776_v21 }
 0xed6   :  { %1401 = vtanh.f32 %v776_v21 }
 0xed7   :  { %1403 = vpow2.f32 %v1191_v24 }
 0xed8   :  { %1405 = vpow2.f32 %v1192_v7 }
 0xedf   :  { %v1400_v3 = vpop.eup %1399 }
 0xee0   :  { %v1402_v23 = vpop.eup %1401  ;;  %801 = vrot.lane.b32.xlu1 %v1400_v3, %s1450_s30 }
 0xee1   :  { %803 = vrot.lane.b32.xlu0 %v1402_v23, %s1450_s30  ;;  %v1404_v25 = vpop.eup %1403 }
 0xee2   :  { %v1406_v26 = vpop.eup %1405  ;;  %v783_v27 = vadd.f32 1.0, %v1404_v25 }
 0xee3   :  { %v784_v28 = vadd.f32 1.0, %v1406_v26 }
 0xee4   :  { %1407 = vrcp.f32 %v783_v27 }
 0xee5   :  { %1409 = vrcp.f32 %v784_v28 }
 0xeee   :  { %v1408_v29 = vpop.eup %1407 }
 0xeef   :  { %v1410_v33 = vpop.eup %1409  ;;  %v797_v39 = vmul.f32 %v1408_v29, %v793_v37 }
 0xef0   :  { %v798_v40 = vmul.f32 %v1410_v33, %v794_v38 }
 0xf52   :  { %v802_v31 = vpop.permute.xlu1 %801 }
 0xf53   :  { %v804_v34 = vpop.permute.xlu0 %803  ;;  %v807_v35 = vmul.f32 %v1408_v29, %v802_v31 }
 0xf54   :  { %v808_v36 = vmul.f32 %v1410_v33, %v804_v34 }
 0xf55   :  { %811 = vrot.lane.b32.xlu1 %v807_v35, %s1451_s3 }
 0xf56   :  { %813 = vrot.lane.b32.xlu0 %v808_v36, %s1451_s3 }
 0xfc7   :  { %v812_v41 = vpop.permute.xlu1 %811 }
 0xfc8   :  { %v814_v42 = vpop.permute.xlu0 %813  ;;  %v817_v43 = vadd.f32 %v812_v41, %v797_v39 }
 0xfc9   :  { %v818_v44 = vadd.f32 %v814_v42, %v798_v40 }
 0xfca   :  { %1411 = vtanh.f32 %v817_v43 }
 0xfcb   :  { %1413 = vtanh.f32 %v818_v44  ;;  %v921_v31 = vrot.slane %v818_v44, 7 }
 0xfd4   :  { %v1412_v45 = vpop.eup %1411 }
 0xfd5   :  { %v1414_v47 = vpop.eup %1413  ;;  %823 = vrot.lane.b32.xlu1 %v1412_v45, %s1450_s30 }
 0xfd6   :  { %825 = vrot.lane.b32.xlu0 %v1414_v47, %s1450_s30 }
0x1047   :  { %v824_v48 = vpop.permute.xlu1 %823 }
0x1048   :  { %v826_v49 = vpop.permute.xlu0 %825  ;;  %v1697_v51 = vmul.f32 %v1408_v29, %v824_v48  ;;  %v920_v29 = vrot.slane %v817_v43, 7 }
0x1049   :  { %v1699_v52 = vmul.f32 %v1410_v33, %v826_v49 }
0x104a   :  { %v842_v53 = vpack.c.bf16 %v1697_v51, %v1697_v51 }
0x104b   :  { %v843_v54 = vpack.c.bf16 %v1699_v52, %v1699_v52 }
0x104c   :  { %v846_v55 = vunpack.c.l.b16 %v842_v53 }
0x104d   :  { %v847_v56 = vunpack.c.l.b16 %v843_v54 }
0x104e   :  { %v848_v57 = vrot.slane %v846_v55, 5 }
0x104f   :  { %v849_v58 = vrot.slane %v847_v56, 4 }
0x1051   :  { %v850_v61 = vsel %vm216_vm3, %v849_v58, %v848_v57 }
0x1052   :  { %v851_v62 = vpack.c.b16 %v850_v61, %v850_v61 }
0x1054   :  { %852 = vrot.lane.b32.xlu1 %v851_v62, %s1451_s3 }
0x10c6   :  { %v853_v63 = vpop.permute.xlu1 %852 }
0x10c7   :  { %1291 = vmatmul.mubr.msk.bf16.vlgmr.msra.gmra.mrb[12].mxu1 %vm100_vm4, %v853_v63 }
0x10c8   :  { %1306 = vmatprep.mubr.msk.bf16.mxu1 %vm1448_vm1, %v1447_v0 }
0x119a   :  { %v891_v1 = vpop.f32.mrb[12].mxu1 }
0x119b   :  { %v898_v2 = vrot.slane %v891_v1, 2  ;;  %v899_v4 = vrot.slane %v891_v1, 3  ;;  %v1292_v8 = vpop.f32.mrb[13].mxu1 }
0x119c   :  { %v894_v9 = vpop.f32.mrb[14].mxu1 }
0x119d   :  { %v902_v10 = vadd.f32 %v898_v2, %v1535_v18  ;;  %v903_v11 = vadd.f32 %v899_v4, %v1533_v15  ;;  %v1293_v12 = vpop.f32.mrb[15].mxu1 }
0x119f   :  { %1415 = vtanh.f32 %v902_v10  ;;  %v1194_v16 = vmul.f32 -1.442695, %v902_v10  ;;  %v1195_v20 = vmul.f32 -1.442695, %v903_v11 }
0x11a0   :  { %1417 = vtanh.f32 %v903_v11 }
0x11a1   :  { %1419 = vpow2.f32 %v1194_v16 }
0x11a2   :  { %1421 = vpow2.f32 %v1195_v20 }
0x11a9   :  { %v1416_v13 = vpop.eup %1415 }
0x11aa   :  { %v1418_v14 = vpop.eup %1417  ;;  %928 = vrot.lane.b32.xlu0 %v1416_v13, %s1450_s30 }
0x11ab   :  { %930 = vrot.lane.b32.xlu1 %v1418_v14, %s1450_s30  ;;  %v1420_v21 = vpop.eup %1419 }
0x11ac   :  { %v1422_v22 = vpop.eup %1421  ;;  %v910_v3 = vadd.f32 1.0, %v1420_v21 }
0x11ad   :  { %v911_v23 = vadd.f32 1.0, %v1422_v22 }
0x11ae   :  { %1423 = vrcp.f32 %v910_v3 }
0x11af   :  { %1425 = vrcp.f32 %v911_v23 }
0x11b8   :  { %v1424_v24 = vpop.eup %1423 }
0x11b9   :  { %v1426_v25 = vpop.eup %1425  ;;  %v924_v33 = vmul.f32 %v1424_v24, %v920_v29 }
0x11ba   :  { %v925_v34 = vmul.f32 %v1426_v25, %v921_v31 }
0x121c   :  { %v929_v7 = vpop.permute.xlu0 %928 }
0x121d   :  { %v931_v26 = vpop.permute.xlu1 %930  ;;  %v934_v27 = vmul.f32 %v1424_v24, %v929_v7 }
0x121e   :  { %v935_v28 = vmul.f32 %v1426_v25, %v931_v26 }
0x121f   :  { %938 = vrot.lane.b32.xlu0 %v934_v27, %s1451_s3 }
0x1220   :  { %940 = vrot.lane.b32.xlu1 %v935_v28, %s1451_s3 }
0x1291   :  { %v939_v35 = vpop.permute.xlu0 %938 }
0x1292   :  { %v941_v36 = vpop.permute.xlu1 %940  ;;  %v944_v37 = vadd.f32 %v939_v35, %v924_v33 }
0x1293   :  { %v945_v38 = vadd.f32 %v941_v36, %v925_v34 }
0x1294   :  { %1427 = vtanh.f32 %v944_v37 }
0x1295   :  { %1429 = vtanh.f32 %v945_v38  ;;  %v1048_v7 = vrot.slane %v945_v38, 7 }
0x129e   :  { %v1428_v39 = vpop.eup %1427 }
0x129f   :  { %v1430_v40 = vpop.eup %1429  ;;  %950 = vrot.lane.b32.xlu0 %v1428_v39, %s1450_s30 }
0x12a0   :  { %952 = vrot.lane.b32.xlu1 %v1430_v40, %s1450_s30 }
0x1311   :  { %v951_v41 = vpop.permute.xlu0 %950 }
0x1312   :  { %v953_v42 = vpop.permute.xlu1 %952  ;;  %v1718_v45 = vmul.f32 %v1424_v24, %v951_v41  ;;  %v1047_v24 = vrot.slane %v944_v37, 7 }
0x1313   :  { %v1720_v43 = vmul.f32 %v1426_v25, %v953_v42 }
0x1314   :  { %v969_v44 = vpack.c.bf16 %v1718_v45, %v1718_v45 }
0x1315   :  { %v970_v47 = vpack.c.bf16 %v1720_v43, %v1720_v43 }
0x1316   :  { %v973_v48 = vunpack.c.l.b16 %v969_v44 }
0x1317   :  { %v974_v49 = vunpack.c.l.b16 %v970_v47 }
0x1318   :  { %v975_v53 = vrot.slane %v973_v48, 6  ;;  %v1199_v48 = vld [vmem:[%s1791_s5] ss:$0 sm:$0xff] }
0x1319   :  { %v976_v54 = vrot.slane %v974_v49, 5 }
0x131b   :  { %v977_v55 = vsel %vm216_vm3, %v976_v54, %v975_v53 }
0x131c   :  { %v978_v56 = vpack.c.b16 %v977_v55, %v977_v55 }
0x131e   :  { %979 = vrot.lane.b32.xlu0 %v978_v56, %s1451_s3 }
0x1390   :  { %v980_v57 = vpop.permute.xlu0 %979 }
0x1391   :  { %1299 = vmatmul.mubr.msk.bf16.vlgmr.msra.gmra.mrb[16].mxu0 %vm100_vm4, %v980_v57 }
0x1464   :  { %v1018_v58 = vpop.f32.mrb[16].mxu0 }
0x1465   :  { %v1025_v61 = vrot.slane %v1018_v58, 1  ;;  %v1026_v62 = vrot.slane %v1018_v58, 2  ;;  %v1300_v63 = vpop.f32.mrb[17].mxu0 }
0x1466   :  { %v1021_v1 = vpop.f32.mrb[18].mxu0 }
0x1467   :  { %v1029_v2 = vadd.f32 %v1025_v61, %v1535_v18  ;;  %v1030_v4 = vadd.f32 %v1026_v62, %v1533_v15  ;;  %v1301_v8 = vpop.f32.mrb[19].mxu0 }
0x1469   :  { %1431 = vtanh.f32 %v1029_v2  ;;  %v1197_v11 = vmul.f32 -1.442695, %v1029_v2  ;;  %v1198_v12 = vmul.f32 -1.442695, %v1030_v4 }
0x146a   :  { %1433 = vtanh.f32 %v1030_v4 }
0x146b   :  { %1435 = vpow2.f32 %v1197_v11 }
0x146c   :  { %1437 = vpow2.f32 %v1198_v12 }
0x1473   :  { %v1432_v9 = vpop.eup %1431 }
0x1474   :  { %v1434_v10 = vpop.eup %1433  ;;  %1055 = vrot.lane.b32.xlu1 %v1432_v9, %s1450_s30 }
0x1475   :  { %1057 = vrot.lane.b32.xlu0 %v1434_v10, %s1450_s30  ;;  %v1436_v13 = vpop.eup %1435 }
0x1476   :  { %v1438_v14 = vpop.eup %1437  ;;  %v1037_v16 = vadd.f32 1.0, %v1436_v13 }
0x1477   :  { %v1038_v20 = vadd.f32 1.0, %v1438_v14 }
0x1478   :  { %1439 = vrcp.f32 %v1037_v16 }
0x1479   :  { %1441 = vrcp.f32 %v1038_v20 }
0x1482   :  { %v1440_v15 = vpop.eup %1439 }
0x1483   :  { %v1442_v21 = vpop.eup %1441  ;;  %v1051_v25 = vmul.f32 %v1440_v15, %v1047_v24 }
0x1484   :  { %v1052_v26 = vmul.f32 %v1442_v21, %v1048_v7 }
0x14e6   :  { %v1056_v18 = vpop.permute.xlu1 %1055 }
0x14e7   :  { %v1058_v22 = vpop.permute.xlu0 %1057  ;;  %v1061_v3 = vmul.f32 %v1440_v15, %v1056_v18 }
0x14e8   :  { %v1062_v23 = vmul.f32 %v1442_v21, %v1058_v22 }
0x14e9   :  { %1065 = vrot.lane.b32.xlu1 %v1061_v3, %s1451_s3 }
0x14ea   :  { %1067 = vrot.lane.b32.xlu0 %v1062_v23, %s1451_s3 }
0x155b   :  { %v1066_v27 = vpop.permute.xlu1 %1065 }
0x155c   :  { %v1068_v28 = vpop.permute.xlu0 %1067  ;;  %v1071_v29 = vadd.f32 %v1066_v27, %v1051_v25 }
0x155d   :  { %v1072_v31 = vadd.f32 %v1068_v28, %v1052_v26 }
0x155e   :  { %1443 = vtanh.f32 %v1071_v29 }
0x155f   :  { %1445 = vtanh.f32 %v1072_v31 }
0x1568   :  { %v1444_v33 = vpop.eup %1443 }
0x1569   :  { %v1446_v34 = vpop.eup %1445  ;;  %1077 = vrot.lane.b32.xlu1 %v1444_v33, %s1450_s30 }
0x156a   :  { %1079 = vrot.lane.b32.xlu0 %v1446_v34, %s1450_s30 }
0x156d   :  { %200 = vrot.lane.b32.xlu1 %v1555_v50, %s1451_s3  ;;  %v1318_v50 = vld [vmem:[%s1790_s4 + $0x8] sm:$0xff]  }
0x156e   :  { %202 = vrot.lane.b32.xlu0 %v1551_v46, %s1451_s3  ;;  %v1317_v46 = vld [vmem:[%s1790_s4] sm:$0xff]  }
0x156f   :  { %1303 = vmatpush3.bf16.msra.mxu1 %v1317_v46 }
0x1570   :  { %1304 = vmatprep.subr.bf16.mxu1 %v1447_v0 }
0x1571   :  { %326 = vrot.lane.b32.xlu1 %v1583_v32, %s1451_s3 }
0x1572   :  { %328 = vrot.lane.b32.xlu0 %v1581_v30, %s1451_s3 }
0x1573   :  { %1305 = vmatpush3.bf16.msra.mxu1 %v1318_v50 }
0x1575   :  { %452 = vrot.lane.b32.xlu1 %v1613_v17, %s1451_s3 }
0x1576   :  { %454 = vrot.lane.b32.xlu0 %v1615_v19, %s1451_s3 }
0x1579   :  { %579 = vrot.lane.b32.xlu1 %v1646_v5, %s1451_s3 }
0x157a   :  { %581 = vrot.lane.b32.xlu0 %v1648_v6, %s1451_s3 }
0x157d   :  { %706 = vrot.lane.b32.xlu1 %v1673_v59, %s1451_s3 }
0x157e   :  { %708 = vrot.lane.b32.xlu0 %v1675_v60, %s1451_s3 }
0x1581   :  { %833 = vrot.lane.b32.xlu1 %v1697_v51, %s1451_s3 }
0x1582   :  { %835 = vrot.lane.b32.xlu0 %v1699_v52, %s1451_s3 }
0x1585   :  { %960 = vrot.lane.b32.xlu1 %v1718_v45, %s1451_s3 }
0x1586   :  { %962 = vrot.lane.b32.xlu0 %v1720_v43, %s1451_s3 }
0x15db   :  { %v1078_v30 = vpop.permute.xlu1 %1077 }
0x15dc   :  { %v1080_v32 = vpop.permute.xlu0 %1079  ;;  %v1083_v17 = vmul.f32 %v1440_v15, %v1078_v30 }
0x15dd   :  { %v1084_v19 = vmul.f32 %v1442_v21, %v1080_v32 }
0x15de   :  { %1087 = vrot.lane.b32.xlu1 %v1083_v17, %s1451_s3 }
0x15df   :  { %1089 = vrot.lane.b32.xlu0 %v1084_v19, %s1451_s3  ;;  %v201_v5 = vpop.permute.xlu1 %200 }
0x15e0   :  { %v203_v6 = vpop.permute.xlu0 %202  ;;  %207 = vst.msk [vmem:[#allocation2] sm:$0x1] %vm206_vm5, %v201_v5 }
0x15e1   :  { %208 = vst.msk [vmem:[#allocation2 + $0x8] sm:$0x1] %vm206_vm5, %v203_v6 }
0x15e3   :  { %v327_v59 = vpop.permute.xlu1 %326 }
0x15e4   :  { %v329_v60 = vpop.permute.xlu0 %328  ;;  %333 = vst.msk [vmem:[#allocation2] sm:$0x2] %vm332_vm6, %v327_v59 }
0x15e5   :  { %334 = vst.msk [vmem:[#allocation2 + $0x8] sm:$0x2] %vm332_vm6, %v329_v60 }
0x15e7   :  { %v453_v0 = vpop.permute.xlu1 %452 }
0x15e8   :  { %v455_v51 = vpop.permute.xlu0 %454  ;;  %459 = vst.msk [vmem:[#allocation2] sm:$0x4] %vm458_vm7, %v453_v0 }
0x15e9   :  { %460 = vst.msk [vmem:[#allocation2 + $0x8] sm:$0x4] %vm458_vm7, %v455_v51 }
0x15eb   :  { %v580_v52 = vpop.permute.xlu1 %579 }
0x15ec   :  { %v582_v35 = vpop.permute.xlu0 %581  ;;  %586 = vst.msk [vmem:[#allocation2] sm:$0x8] %vm585_vm8, %v580_v52 }
0x15ed   :  { %587 = vst.msk [vmem:[#allocation2 + $0x8] sm:$0x8] %vm585_vm8, %v582_v35 }
0x15ef   :  { %v707_v36 = vpop.permute.xlu1 %706 }
0x15f0   :  { %v709_v37 = vpop.permute.xlu0 %708  ;;  %713 = vst.msk [vmem:[#allocation2] sm:$0x10] %vm712_vm9, %v707_v36 }
0x15f1   :  { %714 = vst.msk [vmem:[#allocation2 + $0x8] sm:$0x10] %vm712_vm9, %v709_v37 }
0x15f3   :  { %v834_v38 = vpop.permute.xlu1 %833 }
0x15f4   :  { %v836_v39 = vpop.permute.xlu0 %835  ;;  %840 = vst.msk [vmem:[#allocation2] sm:$0x20] %vm839_vm10, %v834_v38 }
0x15f5   :  { %841 = vst.msk [vmem:[#allocation2 + $0x8] sm:$0x20] %vm839_vm10, %v836_v39 }
0x15f7   :  { %v961_v40 = vpop.permute.xlu1 %960 }
0x15f8   :  { %v963_v41 = vpop.permute.xlu0 %962  ;;  %967 = vst.msk [vmem:[#allocation2] sm:$0x40] %vm966_vm11, %v961_v40 }
0x15f9   :  { %968 = vst.msk [vmem:[#allocation2 + $0x8] sm:$0x40] %vm966_vm11, %v963_v41 }
0x1650   :  { %v1088_v42 = vpop.permute.xlu1 %1087 }
0x1651   :  { %v1090_v45 = vpop.permute.xlu0 %1089  ;;  %1094 = vst.msk [vmem:[#allocation2] sm:$0x80] %vm1093_vm12, %v1088_v42 }
0x1652   :  { %1095 = vst.msk [vmem:[#allocation2 + $0x8] sm:$0x80] %vm1093_vm12, %v1090_v45 }
0x1658   :  { %v1096_v43 = vld [vmem:[#allocation2] sm:$0xff] }
0x1659   :  { %v1097_v44 = vld [vmem:[#allocation2 + $0x8] sm:$0xff] }
0x165a   :  { %v1098_v47 = vpack.c.bf16 %v1097_v44, %v1096_v43 }
0x165c   :  { %1307 = vmatmul.mubr.msk.bf16.vlgmr.msra.gmra.mrb[16].mxu1 %vm100_vm4, %v1098_v47 }
0x172f   :  { %v1159_v49 = vpop.f32.mrb[16].mxu1 }
0x1730   :  { %v1160_v53 = vadd.f32 %v1199_v48, %v1159_v49  ;;  %v1308_v54 = vpop.f32.mrb[17].mxu1 }
0x1731   :  { %v1162_v55 = vpop.f32.mrb[18].mxu1 }
0x1732   :  { %1166 = vst.msk [vmem:[%s1792_s6] sm:$0xff] %vm35_vm2, %v1160_v53  ;;  %v1163_v56 = vadd.f32 %v1199_v48, %v1162_v55  ;;  %v1309_v57 = vpop.f32.mrb[19].mxu1 }
0x1734   :  { %1167 = vst.msk [vmem:[%s1792_s6 + $0x8] sm:$0xff] %vm35_vm2, %v1163_v56 }

</bundles_post_ra>
